<compile_context>
chip_gen: v7x
topology: tpu7x:2x2x1
jax: 0.10.0
libtpu: 0.0.40
codegen_flags: <defaults>
</compile_context>

<pallas_src>
import jax
import jax.numpy as jnp
from jax.experimental import pallas as pl
from jax.experimental.pallas import tpu as pltpu


NUM_CLASSES = 3
LANE_PAD = 128  # pad class dim to a full vreg lane width for dense stores


def tan_head_kernel(sent_ref, w1_ref, b1_ref, w2_ref, b2_ref,
                    w3_ref, b3_ref, w4_ref, b4_ref, prob_ref):
    """softmax(classifier(mean_s sentence_feat)) for one batch tile."""
    sent = sent_ref[...].astype(jnp.float32)              # (TB, S, H)
    s = sent.shape[1]
    # score = softmax over logits constant along S  ->  exactly 1/S per token
    atted = jnp.sum(sent, axis=1) * (1.0 / s)              # (TB, H)

    # classifier: Linear(H,fc_mid) -> Linear(fc_mid,H) -> ReLU
    #             -> Linear(H,fc_mid) -> Linear(fc_mid,3 padded to 128)
    h = jnp.dot(atted, w1_ref[...], preferred_element_type=jnp.float32) + b1_ref[...]
    h = jnp.dot(h, w2_ref[...], preferred_element_type=jnp.float32) + b2_ref[...]
    h = jnp.maximum(h, 0.0)
    h = jnp.dot(h, w3_ref[...], preferred_element_type=jnp.float32) + b3_ref[...]
    logits = jnp.dot(h, w4_ref[...], preferred_element_type=jnp.float32) + b4_ref[...]

    # padded class lanes carry bias -1e30 -> exp underflows to 0, real probs unchanged
    m = jnp.max(logits, axis=-1, keepdims=True)
    e = jnp.exp(logits - m)
    prob_ref[...] = e / jnp.sum(e, axis=-1, keepdims=True)


def _choose_tile_b(batch_size, seq_len, hidden, itemsize):
    """Batch tile: multiple of 8, sentence tile <= ~2 MiB so the Pallas
    double-buffer + resident weights stay well inside scoped VMEM on
    v5e (16 MiB) / v6e (32 MiB) / v7x (32 MiB scoped, 64 MiB physical)."""
    if batch_size <= 8:
        return batch_size
    budget_bytes = 2 * 1024 * 1024
    tb = budget_bytes // max(1, seq_len * hidden * itemsize)
    tb = max(8, min(tb, batch_size))
    if tb >= batch_size:
        return batch_size
    return max(8, (tb // 8) * 8)


def tan_head(mul_pool_feat, sentence_feat, params):
    # mul_pool_feat / att_w / att_b do not affect the head output (the softmax
    # of the broadcast att_linear logits is provably uniform), so they are not
    # streamed into the kernel — saves HBM bytes and a 1-column MXU matmul.
    del mul_pool_feat
    B, S, H = sentence_feat.shape
    fc_mid = params["w1"].shape[1]

    # Lane-dense final head: pad (fc_mid, 3) -> (fc_mid, 128).
    w4p = jnp.zeros((fc_mid, LANE_PAD), jnp.float32).at[:, :NUM_CLASSES].set(params["w4"])
    b4p = jnp.full((1, LANE_PAD), -1e30, jnp.float32).at[:, :NUM_CLASSES].set(params["b4"])

    tile_b = _choose_tile_b(B, S, H, sentence_feat.dtype.itemsize)
    grid = (pl.cdiv(B, tile_b),)

    const2 = lambda i: (0, 0)  # weights: constant block index -> stay VMEM-resident
    in_specs = [
        pl.BlockSpec((tile_b, S, H), lambda i: (i, 0, 0)),       # sentence_feat tile
        pl.BlockSpec((H, fc_mid), const2), pl.BlockSpec((1, fc_mid), const2),
        pl.BlockSpec((fc_mid, H), const2), pl.BlockSpec((1, H), const2),
        pl.BlockSpec((H, fc_mid), const2), pl.BlockSpec((1, fc_mid), const2),
        pl.BlockSpec((fc_mid, LANE_PAD), const2), pl.BlockSpec((1, LANE_PAD), const2),
    ]
    out_spec = pl.BlockSpec((tile_b, LANE_PAD), lambda i: (i, 0))

    itemsize = sentence_feat.dtype.itemsize
    weight_bytes = 4 * (3 * H * fc_mid + fc_mid * LANE_PAD + 2 * fc_mid + H + LANE_PAD)
    cost = pl.CostEstimate(
        flops=2 * B * (S * H + 3 * H * fc_mid + fc_mid * LANE_PAD),
        transcendentals=B * LANE_PAD,
        bytes_accessed=B * S * H * itemsize + B * LANE_PAD * 4 + weight_bytes,
    )

    prob_padded = pl.pallas_call(
        tan_head_kernel,
        out_shape=jax.ShapeDtypeStruct((B, LANE_PAD), jnp.float32),
        grid=grid,
        in_specs=in_specs,
        out_specs=out_spec,
        compiler_params=pltpu.CompilerParams(
            dimension_semantics=("parallel",)),   # lets v7x shard batch over 2 TCs
        cost_estimate=cost,
    )(sentence_feat,
      params["w1"], params["b1"], params["w2"], params["b2"],
      params["w3"], params["b3"], w4p, b4p)

    return prob_padded[:, :NUM_CLASSES]


def tan_forward(batch, params):
    """Post-encoder TAN forward. Returns (loss_input, pred_w_index) like the torch module."""
    # TODO(synk): mul_encoder / sentence_encoder (pretrained BERT/RoBERTa) are not
    # reproduced; their outputs are provided directly in `batch`.
    pred_prob = tan_head(batch["mul_pool_feat"], batch["sentence_feat"], params)
    loss_input = {"pred": pred_prob, "label": batch["gt_label"]}
    pred = jnp.argmax(pred_prob, axis=-1).astype(jnp.int32)
    pred_w_index = jnp.concatenate(
        [batch["index"][:, None].astype(jnp.int32), pred[:, None]], axis=-1)
    return loss_input, pred_w_index


def init_params(key, hidden, fc_mid):
    """Deterministic nn.Linear-style init (uniform +-1/sqrt(fan_in)); biases as (1, n)."""
    def linear(k, fan_in, fan_out):
        kw, kb = jax.random.split(k)
        bound = 1.0 / jnp.sqrt(fan_in)
        w = jax.random.uniform(kw, (fan_in, fan_out), jnp.float32, -bound, bound)
        b = jax.random.uniform(kb, (1, fan_out), jnp.float32, -bound, bound)
        return w, b

    ks = jax.random.split(key, 5)
    att_w, att_b = linear(ks[0], hidden, 1)   # kept for module fidelity (provably no-op)
    w1, b1 = linear(ks[1], hidden, fc_mid)
    w2, b2 = linear(ks[2], fc_mid, hidden)
    w3, b3 = linear(ks[3], hidden, fc_mid)
    w4, b4 = linear(ks[4], fc_mid, 3)
    return {"att_w": att_w, "att_b": att_b,
            "w1": w1, "b1": b1, "w2": w2, "b2": b2,
            "w3": w3, "b3": b3, "w4": w4, "b4": b4}


def tan_head_reference(mul_pool_feat, sentence_feat, params):
    """Pure-JAX reference of the torch post-encoder math (full softmax path)."""
    B, S, _ = sentence_feat.shape
    att_logit = mul_pool_feat @ params["att_w"] + params["att_b"]          # (B, 1)
    score = jax.nn.softmax(jnp.broadcast_to(att_logit, (B, S)), axis=-1)   # uniform
    atted = jnp.sum(sentence_feat * score[:, :, None], axis=1)
    h = atted @ params["w1"] + params["b1"]
    h = h @ params["w2"] + params["b2"]
    h = jnp.maximum(h, 0.0)
    h = h @ params["w3"] + params["b3"]
    logits = h @ params["w4"] + params["b4"]
    return jax.nn.softmax(logits, axis=-1)


if __name__ == "__main__":
    B, S, H, FC_MID = 2, 8, 32, 16

    key = jax.random.PRNGKey(0)
    k_pool, k_sent, k_par = jax.random.split(key, 3)

    # Stand-ins for the encoder outputs (mul_out[1] and sentence_out[0]).
    mul_pool_feat = jax.random.normal(k_pool, (B, H), jnp.float32)
    sentence_feat = jax.random.normal(k_sent, (B, S, H), jnp.float32)

    batch = {
        "mul_pool_feat": mul_pool_feat,
        "sentence_feat": sentence_feat,
        "gt_label": jnp.array([0, 2], dtype=jnp.int32),
        "index": jnp.arange(B, dtype=jnp.int32),
    }
    params = init_params(k_par, H, FC_MID)

    loss_input, pred_w_index = tan_forward(batch, params)
    jax.block_until_ready((loss_input["pred"], pred_w_index))

    # correctness vs the full (softmax-attention) reference path
    ref = tan_head_reference(mul_pool_feat, sentence_feat, params)
    assert jnp.allclose(loss_input["pred"], ref, atol=1e-4, rtol=1e-4), "mismatch vs reference"
    # probabilities sum to 1 (padded lanes contribute exactly 0)
    assert jnp.allclose(jnp.sum(loss_input["pred"], axis=-1), 1.0, atol=1e-5)
    assert loss_input["pred"].shape == (B, NUM_CLASSES)
    assert pred_w_index.shape == (B, 2)
    print("KERNEL_OK")
</pallas_src>

<mosaic_0001>
module attributes {stable_mosaic.version = 11 : i64} {
  func.func @tan_head_kernel(%arg0: i32, %arg1: memref<2x8x32xf32, #tpu.memory_space<vmem>>, %arg2: memref<32x16xf32, #tpu.memory_space<vmem>>, %arg3: memref<1x16xf32, #tpu.memory_space<vmem>>, %arg4: memref<16x32xf32, #tpu.memory_space<vmem>>, %arg5: memref<1x32xf32, #tpu.memory_space<vmem>>, %arg6: memref<32x16xf32, #tpu.memory_space<vmem>>, %arg7: memref<1x16xf32, #tpu.memory_space<vmem>>, %arg8: memref<16x128xf32, #tpu.memory_space<vmem>>, %arg9: memref<1x128xf32, #tpu.memory_space<vmem>>, %arg10: memref<2x128xf32, #tpu.memory_space<vmem>>) attributes {dimension_semantics = [#tpu.dimension_semantics<parallel>], iteration_bounds = array<i64: 1>, scalar_prefetch = 0 : i64, scratch_operands = 0 : i64, tpu.core_type = #tpu.core_type<tc>, window_params = [{transform_indices = @transform_0, window_bounds = array<i64: 2, 8, 32>}, {pipeline_mode = #tpu.pipeline_mode<synchronous>, transform_indices = @transform_1, window_bounds = array<i64: 32, 16>}, {pipeline_mode = #tpu.pipeline_mode<synchronous>, transform_indices = @transform_2, window_bounds = array<i64: 1, 16>}, {pipeline_mode = #tpu.pipeline_mode<synchronous>, transform_indices = @transform_3, window_bounds = array<i64: 16, 32>}, {pipeline_mode = #tpu.pipeline_mode<synchronous>, transform_indices = @transform_4, window_bounds = array<i64: 1, 32>}, {pipeline_mode = #tpu.pipeline_mode<synchronous>, transform_indices = @transform_5, window_bounds = array<i64: 32, 16>}, {pipeline_mode = #tpu.pipeline_mode<synchronous>, transform_indices = @transform_6, window_bounds = array<i64: 1, 16>}, {pipeline_mode = #tpu.pipeline_mode<synchronous>, transform_indices = @transform_7, window_bounds = array<i64: 16, 128>}, {pipeline_mode = #tpu.pipeline_mode<synchronous>, transform_indices = @transform_8, window_bounds = array<i64: 1, 128>}, {transform_indices = @transform_9, window_bounds = array<i64: 2, 128>}]} {
    %c0 = arith.constant 0 : index
    %c0_0 = arith.constant 0 : index
    %c0_1 = arith.constant 0 : index
    %0 = vector.load %arg1[%c0, %c0_0, %c0_1] : memref<2x8x32xf32, #tpu.memory_space<vmem>>, vector<2x8x32xf32>
    %cst = arith.constant dense<0.000000e+00> : vector<2x32xf32>
    %1 = vector.multi_reduction <add>, %0, %cst [1] : vector<2x8x32xf32> to vector<2x32xf32>
    %cst_2 = arith.constant 1.250000e-01 : f32
    %2 = vector.broadcast %cst_2 : f32 to vector<2x32xf32>
    %3 = arith.mulf %1, %2 : vector<2x32xf32>
    %c0_3 = arith.constant 0 : index
    %c0_4 = arith.constant 0 : index
    %4 = vector.load %arg2[%c0_3, %c0_4] : memref<32x16xf32, #tpu.memory_space<vmem>>, vector<32x16xf32>
    %cst_5 = arith.constant dense<0.000000e+00> : vector<2x16xf32>
    %5 = tpu.matmul %3, %4, %cst_5 {dimension_numbers = #tpu.dot_dimension_numbers<[1], [0], [0], [1], [0, 0, 1, 1], [], []>} : vector<2x32xf32>, vector<32x16xf32>, vector<2x16xf32> -> vector<2x16xf32>
    %c0_6 = arith.constant 0 : index
    %c0_7 = arith.constant 0 : index
    %6 = vector.load %arg3[%c0_6, %c0_7] : memref<1x16xf32, #tpu.memory_space<vmem>>, vector<1x16xf32>
    %7 = vector.broadcast %6 : vector<1x16xf32> to vector<2x16xf32>
    %8 = arith.addf %5, %7 : vector<2x16xf32>
    %c0_8 = arith.constant 0 : index
    %c0_9 = arith.constant 0 : index
    %9 = vector.load %arg4[%c0_8, %c0_9] : memref<16x32xf32, #tpu.memory_space<vmem>>, vector<16x32xf32>
    %cst_10 = arith.constant dense<0.000000e+00> : vector<2x32xf32>
    %10 = tpu.matmul %8, %9, %cst_10 {dimension_numbers = #tpu.dot_dimension_numbers<[1], [0], [0], [1], [0, 0, 1, 1], [], []>} : vector<2x16xf32>, vector<16x32xf32>, vector<2x32xf32> -> vector<2x32xf32>
    %c0_11 = arith.constant 0 : index
    %c0_12 = arith.constant 0 : index
    %11 = vector.load %arg5[%c0_11, %c0_12] : memref<1x32xf32, #tpu.memory_space<vmem>>, vector<1x32xf32>
    %12 = vector.broadcast %11 : vector<1x32xf32> to vector<2x32xf32>
    %13 = arith.addf %10, %12 : vector<2x32xf32>
    %cst_13 = arith.constant 0.000000e+00 : f32
    %14 = vector.broadcast %cst_13 : f32 to vector<2x32xf32>
    %15 = arith.maximumf %13, %14 : vector<2x32xf32>
    %c0_14 = arith.constant 0 : index
    %c0_15 = arith.constant 0 : index
    %16 = vector.load %arg6[%c0_14, %c0_15] : memref<32x16xf32, #tpu.memory_space<vmem>>, vector<32x16xf32>
    %cst_16 = arith.constant dense<0.000000e+00> : vector<2x16xf32>
    %17 = tpu.matmul %15, %16, %cst_16 {dimension_numbers = #tpu.dot_dimension_numbers<[1], [0], [0], [1], [0, 0, 1, 1], [], []>} : vector<2x32xf32>, vector<32x16xf32>, vector<2x16xf32> -> vector<2x16xf32>
    %c0_17 = arith.constant 0 : index
    %c0_18 = arith.constant 0 : index
    %18 = vector.load %arg7[%c0_17, %c0_18] : memref<1x16xf32, #tpu.memory_space<vmem>>, vector<1x16xf32>
    %19 = vector.broadcast %18 : vector<1x16xf32> to vector<2x16xf32>
    %20 = arith.addf %17, %19 : vector<2x16xf32>
    %c0_19 = arith.constant 0 : index
    %c0_20 = arith.constant 0 : index
    %21 = vector.load %arg8[%c0_19, %c0_20] : memref<16x128xf32, #tpu.memory_space<vmem>>, vector<16x128xf32>
    %cst_21 = arith.constant dense<0.000000e+00> : vector<2x128xf32>
    %22 = tpu.matmul %20, %21, %cst_21 {dimension_numbers = #tpu.dot_dimension_numbers<[1], [0], [0], [1], [0, 0, 1, 1], [], []>} : vector<2x16xf32>, vector<16x128xf32>, vector<2x128xf32> -> vector<2x128xf32>
    %c0_22 = arith.constant 0 : index
    %c0_23 = arith.constant 0 : index
    %23 = vector.load %arg9[%c0_22, %c0_23] : memref<1x128xf32, #tpu.memory_space<vmem>>, vector<1x128xf32>
    %24 = vector.broadcast %23 : vector<1x128xf32> to vector<2x128xf32>
    %25 = arith.addf %22, %24 : vector<2x128xf32>
    %cst_24 = arith.constant dense<0xFF800000> : vector<2xf32>
    %26 = vector.multi_reduction <maximumf>, %25, %cst_24 [1] : vector<2x128xf32> to vector<2xf32>
    %27 = vector.shape_cast %26 : vector<2xf32> to vector<2x1xf32>
    %28 = vector.broadcast %27 : vector<2x1xf32> to vector<2x128xf32>
    %29 = arith.subf %25, %28 : vector<2x128xf32>
    %30 = math.exp %29 : vector<2x128xf32>
    %cst_25 = arith.constant dense<0.000000e+00> : vector<2xf32>
    %31 = vector.multi_reduction <add>, %30, %cst_25 [1] : vector<2x128xf32> to vector<2xf32>
    %32 = vector.shape_cast %31 : vector<2xf32> to vector<2x1xf32>
    %33 = vector.broadcast %32 : vector<2x1xf32> to vector<2x128xf32>
    %34 = arith.divf %30, %33 : vector<2x128xf32>
    %c0_26 = arith.constant 0 : index
    %c0_27 = arith.constant 0 : index
    %35 = vector.load %arg10[%c0_26, %c0_27] : memref<2x128xf32, #tpu.memory_space<vmem>>, vector<2x128xf32>
    tpu.vector_store %arg10[%c0_26, %c0_27], %34 {strides = array<i32>} : memref<2x128xf32, #tpu.memory_space<vmem>>, vector<2x128xf32>,
    return
  }
  func.func @transform_0(%arg0: i32) -> (i32, i32, i32) {
    %c0_i32 = arith.constant 0 : i32
    %c0_i32_0 = arith.constant 0 : i32
    %c0_i32_1 = arith.constant 0 : i32
    return %arg0, %c0_i32, %c0_i32_0 : i32, i32, i32
  }
  func.func @transform_1(%arg0: i32) -> (i32, i32) {
    %c0_i32 = arith.constant 0 : i32
    %c0_i32_0 = arith.constant 0 : i32
    %c0_i32_1 = arith.constant 0 : i32
    return %c0_i32, %c0_i32_0 : i32, i32
  }
  func.func @transform_2(%arg0: i32) -> (i32, i32) {
    %c0_i32 = arith.constant 0 : i32
    %c0_i32_0 = arith.constant 0 : i32
    %c0_i32_1 = arith.constant 0 : i32
    return %c0_i32, %c0_i32_0 : i32, i32
  }
  func.func @transform_3(%arg0: i32) -> (i32, i32) {
    %c0_i32 = arith.constant 0 : i32
    %c0_i32_0 = arith.constant 0 : i32
    %c0_i32_1 = arith.constant 0 : i32
    return %c0_i32, %c0_i32_0 : i32, i32
  }
  func.func @transform_4(%arg0: i32) -> (i32, i32) {
    %c0_i32 = arith.constant 0 : i32
    %c0_i32_0 = arith.constant 0 : i32
    %c0_i32_1 = arith.constant 0 : i32
    return %c0_i32, %c0_i32_0 : i32, i32
  }
  func.func @transform_5(%arg0: i32) -> (i32, i32) {
    %c0_i32 = arith.constant 0 : i32
    %c0_i32_0 = arith.constant 0 : i32
    %c0_i32_1 = arith.constant 0 : i32
    return %c0_i32, %c0_i32_0 : i32, i32
  }
  func.func @transform_6(%arg0: i32) -> (i32, i32) {
    %c0_i32 = arith.constant 0 : i32
    %c0_i32_0 = arith.constant 0 : i32
    %c0_i32_1 = arith.constant 0 : i32
    return %c0_i32, %c0_i32_0 : i32, i32
  }
  func.func @transform_7(%arg0: i32) -> (i32, i32) {
    %c0_i32 = arith.constant 0 : i32
    %c0_i32_0 = arith.constant 0 : i32
    %c0_i32_1 = arith.constant 0 : i32
    return %c0_i32, %c0_i32_0 : i32, i32
  }
  func.func @transform_8(%arg0: i32) -> (i32, i32) {
    %c0_i32 = arith.constant 0 : i32
    %c0_i32_0 = arith.constant 0 : i32
    %c0_i32_1 = arith.constant 0 : i32
    return %c0_i32, %c0_i32_0 : i32, i32
  }
  func.func @transform_9(%arg0: i32) -> (i32, i32) {
    %c0_i32 = arith.constant 0 : i32
    %c0_i32_0 = arith.constant 0 : i32
    return %arg0, %c0_i32 : i32, i32
  }
}

</mosaic_0001>

<bundles_post_ra>
// kernel: tpu_custom_call.1
= control target key start
LH: loop header
LB: loop body
LE: loop exit
PB: predicated region body
PF: predicated region fallthrough
CT: control target
= control target key end

     0   :  { %v526_v3 = vmov 0.0|0.0   ;;  %vm527_vm0 = vmmov 0   ;;  %v528_v6 = vmov 0.0   ;;  %vm35_vm1 = vcmask 261120   ;;  %s656_s0 = inlined_call_operand.vmem [shape: f32[2,8,32], index: 0, kind: input, shape index: {}]   ;;  %s657_s1 = inlined_call_operand.vmem [shape: f32[32,16], index: 1, kind: input, shape index: {}]   ;;  %s658_s2 = inlined_call_operand.vmem [shape: f32[1,16], index: 2, kind: input, shape index: {}]   ;;  %s659_s3 = inlined_call_operand.vmem [shape: f32[16,32], index: 3, kind: input, shape index: {}]   ;;  %s660_s4 = inlined_call_operand.vmem [shape: f32[1,32], index: 4, kind: input, shape index: {}]   ;;  %s661_s5 = inlined_call_operand.vmem [shape: f32[32,16], index: 5, kind: input, shape index: {}]   ;;  %s662_s6 = inlined_call_operand.vmem [shape: f32[1,16], index: 6, kind: input, shape index: {}]   ;;  %s663_s7 = inlined_call_operand.vmem [shape: f32[16,128], index: 7, kind: input, shape index: {}]   ;;  %s664_s8 = inlined_call_operand.vmem [shape: f32[1,128], index: 8, kind: input, shape index: {}]   ;;  %s665_s9 = inlined_call_operand.hbm [shape: f32[2,128], index: 9, kind: output, shape index: {}]  }
   0x1   :  { %v52_v0 = vld [vmem:[%s657_s1] sm:$0xff]  ;;  %v53_v1 = vld [vmem:[%s657_s1 + $0x8] sm:$0xff]  ;;  %v54_v2 = vld [vmem:[%s657_s1 + $0x10] sm:$0xff]  ;;  %476 = vmatprep.subr.bf16.mxu0 %v526_v3  ;;  %448 = vmatprep.mubr.msk.f32.mxu0 %vm527_vm0, %v528_v6 }
   0x2   :  { %v477_v4 = vpack.c.bf16 %v53_v1, %v52_v0  ;;  %v55_v5 = vld [vmem:[%s657_s1 + $0x18] sm:$0xff]  ;;  %v33_v7 = vld [vmem:[%s656_s0] sm:$0xff]  ;;  %v34_v8 = vld [vmem:[%s656_s0 + $0x8] sm:$0xff]  ;;  %482 = vmatprep.subr.bf16.mxu1 %v526_v3  ;;  %455 = vmatprep.mubr.msk.f32.mxu1 %vm527_vm0, %v528_v6 }
   0x3   :  { %v36_v9 = vsel %vm35_vm1, %v33_v7, 0.0  ;;  %v43_v10 = vsel %vm35_vm1, %v34_v8, 0.0 }
   0x4   :  { %14 = vsyncpa [#allocation3], 0  ;;  %478 = vmatpush3.bf16.msra.mxu0 %v477_v4  ;;  %v480_v11 = vpack.c.bf16 %v55_v5, %v54_v2  ;;  %v37_v12 = vrot.slane %v36_v9, 4  ;;  %v44_v13 = vrot.slane %v43_v10, 4  ;;  %vm65_vm2 = vcmask 1041409   ;;  %v139_v27 = vld [vmem:[%s659_s3] sm:$0xff] }
   0x5   :  { %479 = vmatprep.subr.bf16.mxu0 %v526_v3  ;;  %v140_v28 = vld [vmem:[%s659_s3 + $0x8] sm:$0xff]  ;;  %v223_v30 = vld [vmem:[%s661_s5] sm:$0xff]  ;;  %vm148_vm3 = vcmask 130048   ;;  %v225_v37 = vld [vmem:[%s661_s5 + $0x10] sm:$0xff]  ;;  %vm389_vm4 = vcmask 1041408  }
   0x6   :  { %v38_v14 = vadd.f32 %v37_v12, %v36_v9  ;;  %v45_v15 = vadd.f32 %v44_v13, %v43_v10  ;;  %v483_v29 = vpack.c.bf16 %v140_v28, %v139_v27  ;;  %v224_v31 = vld [vmem:[%s661_s5 + $0x8] sm:$0xff]  ;;  %v416_v32 = vld [vmem:[%s658_s2] ss:$0 sm:$0xff]  ;;  %v226_v38 = vld [vmem:[%s661_s5 + $0x18] sm:$0xff] }
   0x7   :  { %v486_v34 = vpack.c.bf16 %v224_v31, %v223_v30  ;;  %v489_v39 = vpack.c.bf16 %v226_v38, %v225_v37  ;;  %v307_v40 = vld [vmem:[%s663_s7] sm:$0xff]  ;;  %v308_v41 = vld [vmem:[%s663_s7 + $0x8] sm:$0xff] }
   0x8   :  { %481 = vmatpush3.bf16.msra.mxu0 %v480_v11  ;;  %v39_v16 = vrot.slane %v38_v14, 2  ;;  %v46_v17 = vrot.slane %v45_v15, 2  ;;  %484 = vmatpush3.bf16.msra.mxu1 %v483_v29  ;;  %v492_v42 = vpack.c.bf16 %v308_v41, %v307_v40  ;;  %v418_v43 = vld [vmem:[%s660_s4] ss:$0 sm:$0xff]  ;;  %s529_s4 = smov [#allocation2]  }
   0x9   :  { %491 = vmatprep.subr.bf16.mxu0 %v526_v3  ;;  %485 = vmatprep.subr.bf16.mxu1 %v526_v3  ;;  %v420_v48 = vld [vmem:[%s662_s6] ss:$0 sm:$0xff]  ;;  %s408_s6 = sshll.u32 %s529_s4, 4  ;;  %s409_s6 = int_to_ptr.vmem [resolvable:$true] %s408_s6 }
   0xa   :  { %v40_v18 = vadd.f32 %v39_v16, %v38_v14  ;;  %v47_v19 = vadd.f32 %v46_v17, %v45_v15  ;;  %v422_v52 = vld [vmem:[%s664_s8] ss:$0 sm:$0xff]  ;;  %s502_s8 = scalar_lea.vmem %s409_s6, 32  ;;  %p507_p1 = scmp.lt.s32.totalorder %s409_s6, %s409_s6 }
   0xb   :  { %p503_p0 = scmp.ne.s32.totalorder %s409_s6, %s502_s8  ;;  %p508_p2 = scmp.lt.s32.totalorder %s502_s8, %s502_s8 }
   0xc   :  { %v41_v20 = vrot.slane %v40_v18, 1  ;;  %v48_v21 = vrot.slane %v47_v19, 1 }
   0xd   :  { %p509_p3 = por %p508_p2, %p507_p1 }
   0xe   :  { %v42_v22 = vadd.f32 %v41_v20, %v40_v18  ;;  %v49_v23 = vadd.f32 %v48_v21, %v47_v19 }
   0xf   :  { %p510_p4 = pnand %p509_p3, %p503_p0 }
  0x10   :  { %v50_v24 = vmul.f32 0.125, %v42_v22  ;;  %v51_v25 = vmul.f32 0.125, %v49_v23 }
  0x12   :  { %v66_v26 = vsel %vm65_vm2, %v51_v25, %v50_v24 }
  0x13   :  { %449 = vmatmul.mubr.msk.f32.vlgmr.msra.gmra.mrb[0].mxu0 %vm35_vm1, %v66_v26 }
  0x14   :  { %473 = vmatprep.mubr.msk.f32.mxu0 %vm527_vm0, %v528_v6  ;;  %493 = vmatpush3.bf16.msra.mxu0 %v492_v42 }
  0xe6   :  { %v135_v33 = vpop.f32.mrb[0].mxu0 }
  0xe7   :  { %v136_v35 = vadd.f32 %v416_v32, %v135_v33  ;;  %v450_v36 = vpop.f32.mrb[1].mxu0 }
  0xe9   :  { %456 = vmatmul.mubr.msk.f32.vlgmr.msra.gmra.mrb[0].mxu1 %vm148_vm3, %v136_v35 }
  0xea   :  { %487 = vmatpush3.bf16.msra.mxu1 %v486_v34  ;;  %466 = vmatprep.mubr.msk.f32.mxu1 %vm527_vm0, %v528_v6 }
  0xeb   :  { %488 = vmatprep.subr.bf16.mxu1 %v526_v3 }
  0xee   :  { %490 = vmatpush3.bf16.msra.mxu1 %v489_v39 }
 0x1bc   :  { %v218_v44 = vpop.f32.mrb[0].mxu1 }
 0x1bd   :  { %v219_v45 = vadd.f32 %v418_v43, %v218_v44  ;;  %v457_v46 = vpop.f32.mrb[1].mxu1 }
 0x1bf   :  { %v222_v47 = vmax.f32 %v219_v45, 0.0 }
 0x1c1   :  { %467 = vmatmul.mubr.msk.f32.vlgmr.msra.gmra.mrb[2].mxu1 %vm35_vm1, %v222_v47 }
 0x294   :  { %v303_v49 = vpop.f32.mrb[2].mxu1 }
 0x295   :  { %v304_v50 = vadd.f32 %v420_v48, %v303_v49  ;;  %v468_v51 = vpop.f32.mrb[3].mxu1 }
 0x297   :  { %474 = vmatmul.mubr.msk.f32.vlgmr.msra.gmra.mrb[2].mxu0 %vm148_vm3, %v304_v50 }
 0x36a   :  { %v385_v53 = vpop.f32.mrb[2].mxu0 }
 0x36b   :  { %v386_v54 = vadd.f32 %v422_v52, %v385_v53  ;;  %v475_v55 = vpop.f32.mrb[3].mxu0 }
 0x36d   :  { %v390_v56 = vsel %vm389_vm4, %v386_v54, -inf }
 0x36e   :  { %391 = vmax.xlane.f32.xlu0 %v390_v56 }
 0x3fb   :  { %v392_v57 = vpop.xlane.xlu0 %391 }
 0x3fc   :  { %v393_v58 = vsub.f32 %v386_v54, %v392_v57 }
 0x3fe   :  { %v394_v59 = vmul.f32 1.442695, %v393_v58 }
 0x400   :  { %498 = vpow2.f32 %v394_v59 }
 0x40a   :  { %v499_v60 = vpop.eup %498 }
 0x40b   :  { %v396_v61 = vsel %vm389_vm4, %v499_v60, 0.0 }
 0x40c   :  { %397 = vadd.xlane.f32.xlu0 %v396_v61 }
 0x499   :  { %v398_v62 = vpop.xlane.xlu0 %397 }
 0x49a   :  { %500 = vrcp.f32 %v398_v62 }
 0x4a4   :  { %v501_v63 = vpop.eup %500 }
 0x4a5   :  { %v400_v0 = vmul.f32 %v501_v63, %v499_v60 }
 0x4a7   :  { %401 = vst [vmem:[#allocation2] sm:$0x3] %v400_v0 }
 0x4a8   :  { %513 = shalt.err (!%p510_p4)
}
 0x4a9   :  { %s514_s20 = scalar_lea.hbm %s665_s9, 32 }
 0x4aa   :  { %p515_p5 = scmp.ne.s32.totalorder %s665_s9, %s514_s20  ;;  %p518_p6 = scmp.lt.u32.totalorder %s514_s20, %s665_s9 }
 0x4ac   :  { %p520_p7 = pnand %p518_p6, %p515_p5 }
 0x4ae   :  { %523 = shalt.err (!%p520_p7)
}
 0x4af   :  { %411 = dma.vmem_to_hbm [thread:$0]  %s409_s6, 32, %s665_s9, [#allocation3]  }
 0x4b0   :  { %524 = dma.done.wait [#allocation3], 32  }
 0x4b1   :  { %525 = vsyncadd [#allocation3], 4294967264 }
 0x4b2   :  { %415 = vsyncpa [#allocation3], 1 }

</bundles_post_ra>
